<compile_context>
chip_gen: v6e
topology: v6e:2x2x1
jax: 0.10.0
libtpu: 0.0.40
codegen_flags: <defaults>
</compile_context>

<pallas_src>
import jax
import jax.numpy as jnp
from jax.experimental import pallas as pl
from jax.experimental.pallas import tpu as pltpu


H1 = 16      # fc1 out features
H2 = 32      # fc2 out features
LANES = 128  # lane-dense slab / activation width


def _round8(n):
    return ((n + 7) // 8) * 8


def _offsets(statesize):
    """Sublane-aligned row offsets of each parameter block inside the slab."""
    off_w1 = 0
    off_b1 = _round8(statesize)      # 1 row  (bias fc1)
    off_w2 = off_b1 + 8              # LANES rows (fc2 weight, rows H1.. zero)
    off_b2 = off_w2 + LANES          # 1 row  (bias fc2)
    off_w3 = off_b2 + 8              # LANES rows (fc3 weight, rows H2.. zero)
    off_b3 = off_w3 + LANES          # 1 row  (bias fc3)
    rows = off_b3 + 8
    return off_w1, off_b1, off_w2, off_b2, off_w3, off_b3, rows


def pack_params(params, statesize, actionsize):
    """Pack (w1,b1,w2,b2,w3,b3) into one zero-padded (rows, 128) f32 slab."""
    w1, b1, w2, b2, w3, b3 = params
    off_w1, off_b1, off_w2, off_b2, off_w3, off_b3, rows = _offsets(statesize)
    slab = jnp.zeros((rows, LANES), jnp.float32)
    slab = slab.at[off_w1:off_w1 + statesize, :H1].set(w1)
    slab = slab.at[off_b1, :H1].set(b1.reshape(-1))
    slab = slab.at[off_w2:off_w2 + H1, :H2].set(w2)
    slab = slab.at[off_b2, :H2].set(b2.reshape(-1))
    slab = slab.at[off_w3:off_w3 + H2, :actionsize].set(w3)
    slab = slab.at[off_b3, :actionsize].set(b3.reshape(-1))
    return slab


def make_dqn_kernel(statesize, batch,
                    gamma1=1.0, beta1=0.0, gamma2=1.0, beta2=0.0):
    """Build the fused kernel; BN gamma/beta are compile-time constants."""
    S, B = statesize, batch
    _, off_b1, off_w2, off_b2, off_w3, off_b3, _ = _offsets(S)
    eps = 1e-5
    slope = 0.01                       # torch.nn.LeakyReLU default
    inv_n1 = 1.0 / (B * H1)            # valid element counts for BN stats
    inv_n2 = 1.0 / (B * H2)

    def kernel(x_ref, w_ref, o_ref):
        x = x_ref[...]                                   # (B, S)
        # Ones row for MXU column-sum reductions (hoisted; used twice).
        ones_row = jnp.ones((1, B), jnp.float32)

        # --- static, sublane-aligned, lane-dense slices of the packed slab ---
        w1 = w_ref[0:S, :]                               # (S, 128), lanes H1.. zero
        b1 = w_ref[off_b1:off_b1 + 1, :]                 # (1, 128)
        w2 = w_ref[off_w2:off_w2 + LANES, :]             # (128, 128), rows H1.. / lanes H2.. zero
        b2 = w_ref[off_b2:off_b2 + 1, :]                 # (1, 128)
        w3 = w_ref[off_w3:off_w3 + LANES, :]             # (128, 128), rows H2.. / lanes A.. zero
        b3 = w_ref[off_b3:off_b3 + 1, :]                 # (1, 128)

        def bn_leaky(h, inv_n, gamma, beta):
            # Pre-BN pad lanes of h are exactly zero, so full-width sums equal
            # the sums over the B*H valid elements. The O(B) reduction rides
            # the MXU (ones-row matmul); only a (1,128) lane reduce uses XLU.
            col_s = jnp.dot(ones_row, h, preferred_element_type=jnp.float32)
            col_ss = jnp.dot(ones_row, h * h, preferred_element_type=jnp.float32)
            s = jnp.sum(col_s)
            ss = jnp.sum(col_ss)
            m = s * inv_n
            v = jnp.maximum(ss * inv_n - m * m, 0.0)     # guard vs. cancellation
            a = gamma * jax.lax.rsqrt(v + eps)
            c = beta - m * a
            h = h * a + c                                # fused normalize FMA
            return jnp.where(h >= 0, h, slope * h)
            # (shifted pad lanes are killed by the next layer's zero weight rows)

        # --- fc1 + bn1 + leaky_relu ------------------------------------------
        h = jnp.dot(x, w1, preferred_element_type=jnp.float32) + b1
        h = bn_leaky(h, inv_n1, gamma1, beta1)

        # --- fc2 + bn2 + leaky_relu ------------------------------------------
        h = jnp.dot(h, w2, preferred_element_type=jnp.float32) + b2
        h = bn_leaky(h, inv_n2, gamma2, beta2)

        # --- fc3 ---------------------------------------------------------------
        h = jnp.dot(h, w3, preferred_element_type=jnp.float32) + b3
        # Lane-dense unmasked store of the full 128-lane slab; the JAX wrapper
        # slices the first `actionsize` lanes (pad lanes are exactly zero).
        o_ref[...] = h

    return kernel


def dqn_forward(x, packed, actionsize):
    """x: (B, 1, statesize) f32, packed: pack_params(...) -> (B, 1, actionsize)."""
    B, C, S = x.shape
    assert C == 1, "BatchNorm1d(1) requires channel dim of size 1"
    x2d = x.reshape(B, S)

    # Advisory cost for the XLA scheduler (tiny, latency-bound custom call).
    flops = 2 * B * (S * LANES + 2 * LANES * LANES) + 12 * B * LANES
    bytes_accessed = 4 * (x2d.size + packed.size + B * LANES)

    vmem = pl.BlockSpec(memory_space=pltpu.MemorySpace.VMEM)
    out_wide = pl.pallas_call(
        make_dqn_kernel(S, B),
        out_shape=jax.ShapeDtypeStruct((B, LANES), jnp.float32),
        in_specs=[vmem, vmem],
        out_specs=vmem,
        cost_estimate=pl.CostEstimate(flops=flops, transcendentals=2,
                                      bytes_accessed=bytes_accessed),
        # Explicit scoped-VMEM limit (v5e default is only 16 MiB); safe on all gens.
        compiler_params=pltpu.CompilerParams(vmem_limit_bytes=32 * 1024 * 1024),
    )(x2d, packed)
    # Slice to the valid action lanes OUTSIDE the kernel (keeps stores lane-dense).
    return out_wide[:, :actionsize].reshape(B, 1, actionsize)


def init_params(key, statesize, actionsize):
    """Deterministic PyTorch-style Linear init (U(-1/sqrt(fan_in), 1/sqrt(fan_in)))."""
    ks = jax.random.split(key, 3)

    def linear(k, fan_in, fan_out):
        kw, kb = jax.random.split(k)
        bound = 1.0 / (fan_in ** 0.5)
        w = jax.random.uniform(kw, (fan_in, fan_out), jnp.float32, -bound, bound)
        b = jax.random.uniform(kb, (fan_out,), jnp.float32, -bound, bound)
        return w, b

    w1, b1 = linear(ks[0], statesize, H1)
    w2, b2 = linear(ks[1], H1, H2)
    w3, b3 = linear(ks[2], H2, actionsize)
    return (w1, b1, w2, b2, w3, b3)


def dqn_reference(x, params):
    """Pure-JAX reference with identical semantics (for correctness check)."""
    w1, b1, w2, b2, w3, b3 = params
    eps, slope = 1e-5, 0.01
    B, _, S = x.shape

    def bn(h):
        m = jnp.mean(h)
        v = jnp.mean((h - m) ** 2)
        return (h - m) * jax.lax.rsqrt(v + eps)

    h = x.reshape(B, S) @ w1 + b1
    h = bn(h)
    h = jnp.where(h >= 0, h, slope * h)
    h = h @ w2 + b2
    h = bn(h)
    h = jnp.where(h >= 0, h, slope * h)
    h = h @ w3 + b3
    return h.reshape(B, 1, -1)


if __name__ == "__main__":
    statesize, actionsize, batch = 8, 4, 8
    key = jax.random.PRNGKey(0)
    kx, kp = jax.random.split(key)

    x = jax.random.normal(kx, (batch, 1, statesize), dtype=jnp.float32)
    params = init_params(kp, statesize, actionsize)
    packed = pack_params(params, statesize, actionsize)

    out = dqn_forward(x, packed, actionsize)
    out = jax.block_until_ready(out)

    ref = dqn_reference(x, params)
    assert out.shape == (batch, 1, actionsize)
    assert jnp.allclose(out, ref, rtol=1e-3, atol=1e-3), "mismatch vs reference"

    print("KERNEL_OK")
</pallas_src>

<mosaic_0001>
module attributes {stable_mosaic.version = 11 : i64} {
  func.func @kernel(%arg0: memref<8x8xf32, #tpu.memory_space<vmem>>, %arg1: memref<288x128xf32, #tpu.memory_space<vmem>>, %arg2: memref<8x128xf32, #tpu.memory_space<vmem>>) attributes {dimension_semantics = [], scalar_prefetch = 0 : i64, scratch_operands = 0 : i64, tpu.core_type = #tpu.core_type<tc>} {
    %c0 = arith.constant 0 : index
    %c0_0 = arith.constant 0 : index
    %0 = vector.load %arg0[%c0, %c0_0] : memref<8x8xf32, #tpu.memory_space<vmem>>, vector<8x8xf32>
    %cst = arith.constant 1.000000e+00 : f32
    %1 = vector.broadcast %cst : f32 to vector<1x8xf32>
    %c0_1 = arith.constant 0 : index
    %c0_2 = arith.constant 0 : index
    %2 = vector.load %arg1[%c0_1, %c0_2] : memref<288x128xf32, #tpu.memory_space<vmem>>, vector<8x128xf32>
    %c8 = arith.constant 8 : index
    %c0_3 = arith.constant 0 : index
    %3 = vector.load %arg1[%c8, %c0_3] : memref<288x128xf32, #tpu.memory_space<vmem>>, vector<1x128xf32>
    %c16 = arith.constant 16 : index
    %c0_4 = arith.constant 0 : index
    %4 = vector.load %arg1[%c16, %c0_4] : memref<288x128xf32, #tpu.memory_space<vmem>>, vector<128x128xf32>
    %c144 = arith.constant 144 : index
    %c0_5 = arith.constant 0 : index
    %5 = vector.load %arg1[%c144, %c0_5] : memref<288x128xf32, #tpu.memory_space<vmem>>, vector<1x128xf32>
    %c152 = arith.constant 152 : index
    %c0_6 = arith.constant 0 : index
    %6 = vector.load %arg1[%c152, %c0_6] : memref<288x128xf32, #tpu.memory_space<vmem>>, vector<128x128xf32>
    %c280 = arith.constant 280 : index
    %c0_7 = arith.constant 0 : index
    %7 = vector.load %arg1[%c280, %c0_7] : memref<288x128xf32, #tpu.memory_space<vmem>>, vector<1x128xf32>
    %cst_8 = arith.constant dense<0.000000e+00> : vector<8x128xf32>
    %8 = tpu.matmul %0, %2, %cst_8 {dimension_numbers = #tpu.dot_dimension_numbers<[1], [0], [0], [1], [0, 0, 1, 1], [], []>} : vector<8x8xf32>, vector<8x128xf32>, vector<8x128xf32> -> vector<8x128xf32>
    %9 = vector.broadcast %3 : vector<1x128xf32> to vector<8x128xf32>
    %10 = arith.addf %8, %9 : vector<8x128xf32>
    %cst_9 = arith.constant dense<0.000000e+00> : vector<1x128xf32>
    %11 = tpu.matmul %1, %10, %cst_9 {dimension_numbers = #tpu.dot_dimension_numbers<[1], [0], [0], [1], [0, 0, 1, 1], [], []>} : vector<1x8xf32>, vector<8x128xf32>, vector<1x128xf32> -> vector<1x128xf32>
    %12 = arith.mulf %10, %10 : vector<8x128xf32>
    %cst_10 = arith.constant dense<0.000000e+00> : vector<1x128xf32>
    %13 = tpu.matmul %1, %12, %cst_10 {dimension_numbers = #tpu.dot_dimension_numbers<[1], [0], [0], [1], [0, 0, 1, 1], [], []>} : vector<1x8xf32>, vector<8x128xf32>, vector<1x128xf32> -> vector<1x128xf32>
    %14 = vector.shape_cast %11 : vector<1x128xf32> to vector<1x1x128xf32>
    %cst_11 = arith.constant dense<0.000000e+00> : vector<1xf32>
    %15 = vector.multi_reduction <add>, %14, %cst_11 [1, 2] : vector<1x1x128xf32> to vector<1xf32>
    %16 = vector.shape_cast %15 : vector<1xf32> to vector<1x1x1xf32>
    %17 = vector.extract %16[0, 0, 0] : f32 from vector<1x1x1xf32>
    %18 = vector.shape_cast %13 : vector<1x128xf32> to vector<1x1x128xf32>
    %cst_12 = arith.constant dense<0.000000e+00> : vector<1xf32>
    %19 = vector.multi_reduction <add>, %18, %cst_12 [1, 2] : vector<1x1x128xf32> to vector<1xf32>
    %20 = vector.shape_cast %19 : vector<1xf32> to vector<1x1x1xf32>
    %21 = vector.extract %20[0, 0, 0] : f32 from vector<1x1x1xf32>
    %cst_13 = arith.constant 7.812500e-03 : f32
    %22 = arith.mulf %17, %cst_13 : f32
    %cst_14 = arith.constant 7.812500e-03 : f32
    %23 = arith.mulf %21, %cst_14 : f32
    %24 = arith.mulf %22, %22 : f32
    %25 = arith.subf %23, %24 : f32
    %cst_15 = arith.constant 0.000000e+00 : f32
    %26 = arith.maximumf %25, %cst_15 : f32
    %cst_16 = arith.constant 9.99999974E-6 : f32
    %27 = arith.addf %26, %cst_16 : f32
    %28 = math.rsqrt %27 : f32
    %cst_17 = arith.constant 1.000000e+00 : f32
    %29 = arith.mulf %cst_17, %28 : f32
    %30 = arith.mulf %22, %29 : f32
    %cst_18 = arith.constant 0.000000e+00 : f32
    %31 = arith.subf %cst_18, %30 : f32
    %32 = vector.broadcast %29 : f32 to vector<8x128xf32>
    %33 = arith.mulf %10, %32 : vector<8x128xf32>
    %34 = vector.broadcast %31 : f32 to vector<8x128xf32>
    %35 = arith.addf %33, %34 : vector<8x128xf32>
    %cst_19 = arith.constant 0.000000e+00 : f32
    %36 = vector.broadcast %cst_19 : f32 to vector<8x128xf32>
    %37 = arith.cmpf oge, %35, %36 : vector<8x128xf32>
    %cst_20 = arith.constant 0.00999999977 : f32
    %38 = vector.broadcast %cst_20 : f32 to vector<8x128xf32>
    %39 = arith.mulf %38, %35 : vector<8x128xf32>
    %40 = arith.select %37, %35, %39 : vector<8x128xi1>, vector<8x128xf32>
    %cst_21 = arith.constant dense<0.000000e+00> : vector<8x128xf32>
    %41 = tpu.matmul %40, %4, %cst_21 {dimension_numbers = #tpu.dot_dimension_numbers<[1], [0], [0], [1], [0, 0, 1, 1], [], []>} : vector<8x128xf32>, vector<128x128xf32>, vector<8x128xf32> -> vector<8x128xf32>
    %42 = vector.broadcast %5 : vector<1x128xf32> to vector<8x128xf32>
    %43 = arith.addf %41, %42 : vector<8x128xf32>
    %cst_22 = arith.constant dense<0.000000e+00> : vector<1x128xf32>
    %44 = tpu.matmul %1, %43, %cst_22 {dimension_numbers = #tpu.dot_dimension_numbers<[1], [0], [0], [1], [0, 0, 1, 1], [], []>} : vector<1x8xf32>, vector<8x128xf32>, vector<1x128xf32> -> vector<1x128xf32>
    %45 = arith.mulf %43, %43 : vector<8x128xf32>
    %cst_23 = arith.constant dense<0.000000e+00> : vector<1x128xf32>
    %46 = tpu.matmul %1, %45, %cst_23 {dimension_numbers = #tpu.dot_dimension_numbers<[1], [0], [0], [1], [0, 0, 1, 1], [], []>} : vector<1x8xf32>, vector<8x128xf32>, vector<1x128xf32> -> vector<1x128xf32>
    %47 = vector.shape_cast %44 : vector<1x128xf32> to vector<1x1x128xf32>
    %cst_24 = arith.constant dense<0.000000e+00> : vector<1xf32>
    %48 = vector.multi_reduction <add>, %47, %cst_24 [1, 2] : vector<1x1x128xf32> to vector<1xf32>
    %49 = vector.shape_cast %48 : vector<1xf32> to vector<1x1x1xf32>
    %50 = vector.extract %49[0, 0, 0] : f32 from vector<1x1x1xf32>
    %51 = vector.shape_cast %46 : vector<1x128xf32> to vector<1x1x128xf32>
    %cst_25 = arith.constant dense<0.000000e+00> : vector<1xf32>
    %52 = vector.multi_reduction <add>, %51, %cst_25 [1, 2] : vector<1x1x128xf32> to vector<1xf32>
    %53 = vector.shape_cast %52 : vector<1xf32> to vector<1x1x1xf32>
    %54 = vector.extract %53[0, 0, 0] : f32 from vector<1x1x1xf32>
    %cst_26 = arith.constant 3.906250e-03 : f32
    %55 = arith.mulf %50, %cst_26 : f32
    %cst_27 = arith.constant 3.906250e-03 : f32
    %56 = arith.mulf %54, %cst_27 : f32
    %57 = arith.mulf %55, %55 : f32
    %58 = arith.subf %56, %57 : f32
    %cst_28 = arith.constant 0.000000e+00 : f32
    %59 = arith.maximumf %58, %cst_28 : f32
    %cst_29 = arith.constant 9.99999974E-6 : f32
    %60 = arith.addf %59, %cst_29 : f32
    %61 = math.rsqrt %60 : f32
    %cst_30 = arith.constant 1.000000e+00 : f32
    %62 = arith.mulf %cst_30, %61 : f32
    %63 = arith.mulf %55, %62 : f32
    %cst_31 = arith.constant 0.000000e+00 : f32
    %64 = arith.subf %cst_31, %63 : f32
    %65 = vector.broadcast %62 : f32 to vector<8x128xf32>
    %66 = arith.mulf %43, %65 : vector<8x128xf32>
    %67 = vector.broadcast %64 : f32 to vector<8x128xf32>
    %68 = arith.addf %66, %67 : vector<8x128xf32>
    %cst_32 = arith.constant 0.000000e+00 : f32
    %69 = vector.broadcast %cst_32 : f32 to vector<8x128xf32>
    %70 = arith.cmpf oge, %68, %69 : vector<8x128xf32>
    %cst_33 = arith.constant 0.00999999977 : f32
    %71 = vector.broadcast %cst_33 : f32 to vector<8x128xf32>
    %72 = arith.mulf %71, %68 : vector<8x128xf32>
    %73 = arith.select %70, %68, %72 : vector<8x128xi1>, vector<8x128xf32>
    %cst_34 = arith.constant dense<0.000000e+00> : vector<8x128xf32>
    %74 = tpu.matmul %73, %6, %cst_34 {dimension_numbers = #tpu.dot_dimension_numbers<[1], [0], [0], [1], [0, 0, 1, 1], [], []>} : vector<8x128xf32>, vector<128x128xf32>, vector<8x128xf32> -> vector<8x128xf32>
    %75 = vector.broadcast %7 : vector<1x128xf32> to vector<8x128xf32>
    %76 = arith.addf %74, %75 : vector<8x128xf32>
    %c0_35 = arith.constant 0 : index
    %c0_36 = arith.constant 0 : index
    %77 = vector.load %arg2[%c0_35, %c0_36] : memref<8x128xf32, #tpu.memory_space<vmem>>, vector<8x128xf32>
    tpu.vector_store %arg2[%c0_35, %c0_36], %76 {strides = array<i32>} : memref<8x128xf32, #tpu.memory_space<vmem>>, vector<8x128xf32>,
    return
  }
}

</mosaic_0001>

<bundles_post_ra>
// kernel: tpu_custom_call.1
= control target key start
LH: loop header
LB: loop body
LE: loop exit
PB: predicated region body
PF: predicated region fallthrough
CT: control target
= control target key end

     0   :  { %7 = vsyncpa [#allocation3], 0  ;;  %s1029_s0 = inlined_call_operand.hbm [shape: f32[8,8], index: 0, kind: input, shape index: {}]   ;;  %s1030_s1 = inlined_call_operand.hbm [shape: f32[288,128], index: 1, kind: input, shape index: {}]   ;;  %s1031_s2 = inlined_call_operand.hbm [shape: f32[8,128], index: 2, kind: output, shape index: {}]  }
   0x1   :  { %8 = vsyncpa [#allocation6], 0 }
   0x2   :  { %9 = vsyncpa [#allocation4], 0  ;;  %s918_s9 = smov [#allocation2]   ;;  %s919_s11 = smov [#allocation5]  }
   0x3   :  { %s16_s10 = sshll.u32 %s918_s9, 4  ;;  %s25_s12 = sshll.u32 %s919_s11, 4  ;;  %s17_s10 = int_to_ptr.vmem [resolvable:$true] %s16_s10  ;;  %s26_s12 = int_to_ptr.vmem [resolvable:$true] %s25_s12 }
   0x4   :  { %s860_s13 = scalar_lea.vmem %s17_s10, 128  ;;  %p865_p1 = scmp.lt.s32.totalorder %s17_s10, %s17_s10 }
   0x5   :  { %p861_p0 = scmp.ne.s32.totalorder %s17_s10, %s860_s13  ;;  %p866_p2 = scmp.lt.s32.totalorder %s860_s13, %s860_s13 }
   0x7   :  { %p867_p3 = por %p866_p2, %p865_p1 }
   0x9   :  { %p868_p4 = pnand %p867_p3, %p861_p0 }
   0xb   :  { %871 = shalt.err (!%p868_p4)
}
   0xc   :  { %19 = dma.hbm_to_vmem [thread:$0]  %s1029_s0, 128, %s17_s10, [#allocation3]  }
   0xd   :  { %s880_s16 = scalar_lea.vmem %s26_s12, 4608  ;;  %p885_p6 = scmp.lt.s32.totalorder %s26_s12, %s26_s12 }
   0xe   :  { %p881_p5 = scmp.ne.s32.totalorder %s26_s12, %s880_s16  ;;  %p886_p7 = scmp.lt.s32.totalorder %s880_s16, %s880_s16 }
  0x10   :  { %p887_p8 = por %p886_p7, %p885_p6 }
  0x12   :  { %p888_p9 = pnand %p887_p8, %p881_p5 }
  0x14   :  { %891 = shalt.err (!%p888_p9)
}
  0x15   :  { %s920_s17 = smov 128   ;;  %s921_s18 = smov 8  }
  0x16   :  { %31 = dma.hbm_to_vmem [thread:$0]  %s1030_s1, 4608, %s26_s12, [#allocation6], %s920_s17, %s920_s17, %s921_s18  }
  0x17   :  { %912 = dma.done.wait [#allocation3], 128  }
  0x18   :  { %913 = vsyncadd [#allocation3], 4294967168 }
  0x19   :  { %914 = dma.done.wait [#allocation6], 4608  }
  0x1a   :  { %915 = vsyncadd [#allocation6], 4294962688  ;;  %v922_v0 = vmov 0.0   ;;  %vm923_vm0 = vmmov 0   ;;  %vm79_vm1 = vcmask 64512   ;;  %v39_v1 = vld [vmem:[#allocation5] sm:$0xff] }
  0x1b   :  { %732 = vmatprep.subr.mxu1 %v922_v0  ;;  %734 = vmatprep.mubr.msk.f32.mxu1 %vm923_vm0, %v922_v0  ;;  %v38_v2 = vld [vmem:[#allocation2] sm:$0xff]  ;;  %v680_v3 = vld [vmem:[#allocation5 + $0x8] ss:$0 sm:$0xff]  ;;  %v924_v8 = vmov 1.0   ;;  %vm297_vm2 = vcmask 1040384   ;;  %v55_v16 = vld [vmem:[#allocation5 + $0x80] sm:$0xff] }
  0x1c   :  { %742 = vmatprep.subr.mxu0 %v922_v0  ;;  %744 = vmatprep.mubr.msk.f32.mxu0 %vm923_vm0, %v922_v0  ;;  %v56_v15 = vld [vmem:[#allocation5 + $0x88] sm:$0xff]  ;;  %v54_v17 = vld [vmem:[#allocation5 + $0x78] sm:$0xff]  ;;  %v53_v18 = vld [vmem:[#allocation5 + $0x70] sm:$0xff]  ;;  %s925_s25 = smov 0.0   ;;  %s926_s14 = smov [#allocation7]  }
  0x1d   :  { %733 = vmatpush3.msra.mxu1 %v39_v1  ;;  %v52_v19 = vld [vmem:[#allocation5 + $0x68] sm:$0xff]  ;;  %v51_v20 = vld [vmem:[#allocation5 + $0x60] sm:$0xff]  ;;  %v50_v21 = vld [vmem:[#allocation5 + $0x58] sm:$0xff]  ;;  %s670_s15 = sshll.u32 %s926_s14, 4  ;;  %s671_s15 = int_to_ptr.vmem [resolvable:$true] %s670_s15 }
  0x1e   :  { %735 = vmatmul.mubr.msk.f32.vlgmr.msra.gmra.mxu1 %vm79_vm1, %v38_v2  ;;  %737 = vmatprep.subr.mxu1 %v922_v0  ;;  %v49_v22 = vld [vmem:[#allocation5 + $0x50] sm:$0xff]  ;;  %v48_v23 = vld [vmem:[#allocation5 + $0x48] sm:$0xff]  ;;  %v47_v24 = vld [vmem:[#allocation5 + $0x40] sm:$0xff]  ;;  %s892_s16 = scalar_lea.vmem %s671_s15, 128  ;;  %p897_p11 = scmp.lt.s32.totalorder %s671_s15, %s671_s15 }
  0x1f   :  { %739 = vmatprep.mubr.msk.f32.mxu1 %vm923_vm0, %v922_v0  ;;  %v46_v35 = vld [vmem:[#allocation5 + $0x38] sm:$0xff]  ;;  %v45_v38 = vld [vmem:[#allocation5 + $0x30] sm:$0xff]  ;;  %v44_v40 = vld [vmem:[#allocation5 + $0x28] sm:$0xff]  ;;  %p893_p10 = scmp.ne.s32.totalorder %s671_s15, %s892_s16  ;;  %p898_p12 = scmp.lt.s32.totalorder %s892_s16, %s892_s16 }
  0x20   :  { %v43_v42 = vld [vmem:[#allocation5 + $0x20] sm:$0xff]  ;;  %v42_v43 = vld [vmem:[#allocation5 + $0x18] sm:$0xff]  ;;  %v41_v44 = vld [vmem:[#allocation5 + $0x10] sm:$0xff] }
  0x21   :  { %v684_v53 = vld [vmem:[#allocation5 + $0x90] ss:$0 sm:$0xff]  ;;  %v72_v2 = vld [vmem:[#allocation5 + $0x108] sm:$0xff]  ;;  %p899_p13 = por %p898_p12, %p897_p11 }
  0x22   :  { %v73_v1 = vld [vmem:[#allocation5 + $0x110] sm:$0xff] }
  0x23   :  { %p900_p0 = pnand %p899_p13, %p893_p10 }
  0xde   :  { %v149_v4 = vpop.f32.mrf.mxu1 }
  0xdf   :  { %v958_v5 = vadd.f32 %v680_v3, %v149_v4  ;;  %v71_v3 = vld [vmem:[#allocation5 + $0x100] sm:$0xff]  ;;  %v70_v4 = vld [vmem:[#allocation5 + $0xf8] sm:$0xff] }
  0xe0   :  { %v736_v6 = vpop.f32.mrf.mxu1 }
  0xe1   :  { %738 = vmatpush3.msra.mxu1 %v958_v5  ;;  %v226_v7 = vmul.f32 %v958_v5, %v958_v5  ;;  %v68_v6 = vld [vmem:[#allocation5 + $0xe8] sm:$0xff] }
  0xe2   :  { %740 = vmatmul.mubr.msk.f32.vlgmr.msra.gmra.mxu1 %vm79_vm1, %v924_v8  ;;  %747 = vmatprep.subr.mxu1 %v922_v0 }
  0xe3   :  { %743 = vmatpush3.msra.mxu0 %v226_v7  ;;  %779 = vmatprep.mubr.msk.f32.mxu1 %vm923_vm0, %v922_v0  ;;  %v67_v7 = vld [vmem:[#allocation5 + $0xe0] sm:$0xff] }
  0xe4   :  { %745 = vmatmul.mubr.msk.f32.vlgmr.msra.gmra.mxu0 %vm79_vm1, %v924_v8  ;;  %782 = vmatprep.subr.mxu0 %v922_v0 }
  0xe5   :  { %784 = vmatprep.mubr.msk.f32.mxu0 %vm923_vm0, %v922_v0  ;;  %748 = vmatpush3.msra.mxu1 %v56_v15 }
  0xe6   :  { %749 = vmatprep.subr.mxu1 %v922_v0 }
  0xe7   :  { %750 = vmatpush3.msra.mxu1 %v55_v16 }
  0xe8   :  { %751 = vmatprep.subr.mxu1 %v922_v0 }
  0xe9   :  { %752 = vmatpush3.msra.mxu1 %v54_v17 }
  0xea   :  { %753 = vmatprep.subr.mxu1 %v922_v0 }
  0xeb   :  { %754 = vmatpush3.msra.mxu1 %v53_v18 }
  0xec   :  { %755 = vmatprep.subr.mxu1 %v922_v0 }
  0xed   :  { %756 = vmatpush3.msra.mxu1 %v52_v19 }
  0xee   :  { %757 = vmatprep.subr.mxu1 %v922_v0 }
  0xef   :  { %758 = vmatpush3.msra.mxu1 %v51_v20 }
  0xf0   :  { %759 = vmatprep.subr.mxu1 %v922_v0 }
  0xf1   :  { %760 = vmatpush3.msra.mxu1 %v50_v21  ;;  %v63_v21 = vld [vmem:[#allocation5 + $0xc0] sm:$0xff] }
  0xf2   :  { %761 = vmatprep.subr.mxu1 %v922_v0 }
  0xf3   :  { %762 = vmatpush3.msra.mxu1 %v49_v22 }
  0xf4   :  { %763 = vmatprep.subr.mxu1 %v922_v0 }
  0xf5   :  { %764 = vmatpush3.msra.mxu1 %v48_v23 }
  0xf6   :  { %765 = vmatprep.subr.mxu1 %v922_v0 }
  0xf7   :  { %766 = vmatpush3.msra.mxu1 %v47_v24  ;;  %v62_v24 = vld [vmem:[#allocation5 + $0xb8] sm:$0xff] }
  0xf8   :  { %767 = vmatprep.subr.mxu1 %v922_v0 }
  0xf9   :  { %768 = vmatpush3.msra.mxu1 %v46_v35 }
  0xfa   :  { %769 = vmatprep.subr.mxu1 %v922_v0 }
  0xfb   :  { %770 = vmatpush3.msra.mxu1 %v45_v38  ;;  %v687_v38 = vld [vmem:[#allocation5 + $0x118] ss:$0 sm:$0xff] }
  0xfc   :  { %771 = vmatprep.subr.mxu1 %v922_v0 }
  0xfd   :  { %772 = vmatpush3.msra.mxu1 %v44_v40 }
  0xfe   :  { %773 = vmatprep.subr.mxu1 %v922_v0 }
  0xff   :  { %774 = vmatpush3.msra.mxu1 %v43_v42 }
 0x100   :  { %775 = vmatprep.subr.mxu1 %v922_v0 }
 0x101   :  { %776 = vmatpush3.msra.mxu1 %v42_v43 }
 0x102   :  { %777 = vmatprep.subr.mxu1 %v922_v0 }
 0x103   :  { %778 = vmatpush3.msra.mxu1 %v41_v44 }
 0x1a2   :  { %v222_v9 = vpop.f32.mrf.mxu1 }
 0x1a3   :  { %v298_v10 = vsel %vm297_vm2, %v222_v9, 0.0  ;;  %v65_v9 = vld [vmem:[#allocation5 + $0xd0] sm:$0xff] }
 0x1a4   :  { %v293_v11 = vpop.f32.mrf.mxu0  ;;  %299 = vadd.xlane.f32.xlu0 %v298_v10  ;;  %v741_v12 = vpop.f32.mrf.mxu1  ;;  %v64_v10 = vld [vmem:[#allocation5 + $0xc8] sm:$0xff] }
 0x1a5   :  { %v308_v13 = vsel %vm297_vm2, %v293_v11, 0.0 }
 0x1a6   :  { %v746_v14 = vpop.f32.mrf.mxu0 }
 0x1a8   :  { %309 = vadd.xlane.f32.xlu0 %v308_v13 }
 0x22d   :  { %v300_v25 = vpop.xlane.xlu0 %299 }
 0x22e   :  { %v301_v26 = vrot.slane %v300_v25, 4 }
 0x230   :  { %v302_v27 = vadd.f32 %v301_v26, %v300_v25  ;;  %v61_v26 = vld [vmem:[#allocation5 + $0xb0] sm:$0xff] }
 0x231   :  { %v310_v28 = vpop.xlane.xlu0 %309 }
 0x232   :  { %v303_v29 = vrot.slane %v302_v27, 2  ;;  %v311_v30 = vrot.slane %v310_v28, 4 }
 0x234   :  { %v312_v31 = vadd.f32 %v311_v30, %v310_v28  ;;  %v304_v32 = vadd.f32 %v303_v29, %v302_v27  ;;  %v60_v28 = vld [vmem:[#allocation5 + $0xa8] sm:$0xff]  ;;  %v59_v29 = vld [vmem:[#allocation5 + $0xa0] sm:$0xff]  ;;  %v58_v30 = vld [vmem:[#allocation5 + $0x98] sm:$0xff] }
 0x236   :  { %v313_v33 = vrot.slane %v312_v31, 2  ;;  %v305_v34 = vrot.slane %v304_v32, 1 }
 0x238   :  { %v314_v36 = vadd.f32 %v313_v33, %v312_v31  ;;  %v306_v37 = vadd.f32 %v305_v34, %v304_v32 }
 0x23a   :  { %827 = vpush %v306_v37  ;;  %v315_v39 = vrot.slane %v314_v36, 1 }
 0x23c   :  { %v316_v41 = vadd.f32 %v315_v39, %v314_v36 }
 0x23e   :  { %829 = vpush %v316_v41 }
 0x26b   :  { %s828_s0 = spop %827 }
 0x26c   :  { %s318_s1 = smul.f32 0.0078125, %s828_s0 }
 0x26e   :  { %s320_s21 = smul.f32 %s318_s1, %s318_s1 }
 0x26f   :  { %s830_s22 = spop %829 }
 0x270   :  { %s319_s23 = smul.f32 0.0078125, %s830_s22 }
 0x272   :  { %s321_s24 = ssub.f32 %s319_s23, %s320_s21 }
 0x274   :  { %s322_s26 = smax.f32 %s925_s25, %s321_s24 }
 0x275   :  { %s323_s27 = sadd.f32 1e-05, %s322_s26 }
 0x277   :  { %v324_v45 = vstv %s323_s27 }
 0x278   :  { %848 = vrsqrt.f32 %v324_v45 }
 0x285   :  { %v849_v46 = vpop.eup %848 }
 0x286   :  { %831 = vpush %v849_v46 }
 0x2b7   :  { %s832_s28 = spop %831 }
 0x2b8   :  { %s327_s29 = smul.f32 %s832_s28, %s318_s1  ;;  %v329_v47 = vstv %s832_s28 }
 0x2b9   :  { %v330_v48 = vmul.f32 %v329_v47, %v958_v5  ;;  %v69_v5 = vld [vmem:[#allocation5 + $0xf0] sm:$0xff] }
 0x2ba   :  { %s328_s30 = ssub.f32 0.0, %s327_s29 }
 0x2bc   :  { %v331_v49 = vstv %s328_s30 }
 0x2bd   :  { %v332_v50 = vadd.f32 %v331_v49, %v330_v48 }
 0x2bf   :  { %vm333_vm3 = vcmp.ge.f32.partialorder %v332_v50, 0.0  ;;  %v334_v51 = vmul.f32 0.01, %v332_v50 }
 0x2c1   :  { %v335_v52 = vsel %vm333_vm3, %v332_v50, %v334_v51 }
 0x2c2   :  { %780 = vmatmul.mubr.f32.vlgmr.msra.gmra.mxu1 %v335_v52 }
 0x382   :  { %v406_v54 = vpop.f32.mrf.mxu1 }
 0x383   :  { %v992_v55 = vadd.f32 %v684_v53, %v406_v54 }
 0x384   :  { %v781_v56 = vpop.f32.mrf.mxu1 }
 0x385   :  { %v480_v57 = vmul.f32 %v992_v55, %v992_v55  ;;  %783 = vmatpush3.msra.mxu0 %v992_v55 }
 0x386   :  { %785 = vmatmul.mubr.msk.f32.vlgmr.msra.gmra.mxu0 %vm79_vm1, %v924_v8  ;;  %787 = vmatprep.subr.mxu0 %v922_v0 }
 0x387   :  { %788 = vmatpush3.msra.mxu0 %v480_v57  ;;  %789 = vmatprep.mubr.msk.f32.mxu0 %vm923_vm0, %v922_v0 }
 0x388   :  { %792 = vmatprep.subr.mxu0 %v922_v0 }
 0x38a   :  { %790 = vmatmul.mubr.msk.f32.vlgmr.msra.gmra.mxu0 %vm79_vm1, %v924_v8  ;;  %v66_v8 = vld [vmem:[#allocation5 + $0xd8] sm:$0xff] }
 0x38b   :  { %824 = vmatprep.mubr.msk.f32.mxu0 %vm923_vm0, %v922_v0  ;;  %793 = vmatpush3.msra.mxu0 %v73_v1 }
 0x38c   :  { %794 = vmatprep.subr.mxu0 %v922_v0 }
 0x38d   :  { %795 = vmatpush3.msra.mxu0 %v72_v2 }
 0x38e   :  { %796 = vmatprep.subr.mxu0 %v922_v0 }
 0x38f   :  { %797 = vmatpush3.msra.mxu0 %v71_v3 }
 0x390   :  { %798 = vmatprep.subr.mxu0 %v922_v0 }
 0x391   :  { %799 = vmatpush3.msra.mxu0 %v70_v4 }
 0x392   :  { %800 = vmatprep.subr.mxu0 %v922_v0 }
 0x393   :  { %801 = vmatpush3.msra.mxu0 %v69_v5 }
 0x394   :  { %802 = vmatprep.subr.mxu0 %v922_v0 }
 0x395   :  { %803 = vmatpush3.msra.mxu0 %v68_v6 }
 0x396   :  { %804 = vmatprep.subr.mxu0 %v922_v0 }
 0x397   :  { %805 = vmatpush3.msra.mxu0 %v67_v7 }
 0x398   :  { %806 = vmatprep.subr.mxu0 %v922_v0 }
 0x399   :  { %807 = vmatpush3.msra.mxu0 %v66_v8 }
 0x39a   :  { %808 = vmatprep.subr.mxu0 %v922_v0 }
 0x39b   :  { %809 = vmatpush3.msra.mxu0 %v65_v9 }
 0x39c   :  { %810 = vmatprep.subr.mxu0 %v922_v0 }
 0x39d   :  { %811 = vmatpush3.msra.mxu0 %v64_v10 }
 0x39e   :  { %812 = vmatprep.subr.mxu0 %v922_v0 }
 0x39f   :  { %813 = vmatpush3.msra.mxu0 %v63_v21 }
 0x3a0   :  { %814 = vmatprep.subr.mxu0 %v922_v0 }
 0x3a1   :  { %815 = vmatpush3.msra.mxu0 %v62_v24 }
 0x3a2   :  { %816 = vmatprep.subr.mxu0 %v922_v0 }
 0x3a3   :  { %817 = vmatpush3.msra.mxu0 %v61_v26 }
 0x3a4   :  { %818 = vmatprep.subr.mxu0 %v922_v0 }
 0x3a5   :  { %819 = vmatpush3.msra.mxu0 %v60_v28 }
 0x3a6   :  { %820 = vmatprep.subr.mxu0 %v922_v0 }
 0x3a7   :  { %821 = vmatpush3.msra.mxu0 %v59_v29 }
 0x3a8   :  { %822 = vmatprep.subr.mxu0 %v922_v0 }
 0x3a9   :  { %823 = vmatpush3.msra.mxu0 %v58_v30 }
 0x446   :  { %v476_v58 = vpop.f32.mrf.mxu0 }
 0x447   :  { %v551_v59 = vsel %vm297_vm2, %v476_v58, 0.0 }
 0x448   :  { %552 = vadd.xlane.f32.xlu1 %v551_v59  ;;  %v786_v60 = vpop.f32.mrf.mxu0 }
 0x44a   :  { %v547_v61 = vpop.f32.mrf.mxu0 }
 0x44b   :  { %v561_v62 = vsel %vm297_vm2, %v547_v61, 0.0 }
 0x44c   :  { %562 = vadd.xlane.f32.xlu1 %v561_v62  ;;  %v791_v63 = vpop.f32.mrf.mxu0 }
 0x4d1   :  { %v553_v11 = vpop.xlane.xlu1 %552 }
 0x4d2   :  { %v554_v12 = vrot.slane %v553_v11, 4 }
 0x4d4   :  { %v555_v13 = vadd.f32 %v554_v12, %v553_v11 }
 0x4d5   :  { %v563_v14 = vpop.xlane.xlu1 %562 }
 0x4d6   :  { %v556_v15 = vrot.slane %v555_v13, 2  ;;  %v564_v16 = vrot.slane %v563_v14, 4 }
 0x4d8   :  { %v565_v17 = vadd.f32 %v564_v16, %v563_v14  ;;  %v557_v18 = vadd.f32 %v556_v15, %v555_v13 }
 0x4da   :  { %v566_v19 = vrot.slane %v565_v17, 2  ;;  %v558_v20 = vrot.slane %v557_v18, 1 }
 0x4dc   :  { %v567_v22 = vadd.f32 %v566_v19, %v565_v17  ;;  %v559_v23 = vadd.f32 %v558_v20, %v557_v18 }
 0x4de   :  { %833 = vpush %v559_v23  ;;  %v568_v25 = vrot.slane %v567_v22, 1 }
 0x4e0   :  { %v569_v27 = vadd.f32 %v568_v25, %v567_v22 }
 0x4e2   :  { %835 = vpush %v569_v27 }
 0x50f   :  { %s834_s3 = spop %833 }
 0x510   :  { %s571_s4 = smul.f32 0.00390625, %s834_s3 }
 0x512   :  { %s573_s5 = smul.f32 %s571_s4, %s571_s4 }
 0x513   :  { %s836_s6 = spop %835 }
 0x514   :  { %s572_s7 = smul.f32 0.00390625, %s836_s6 }
 0x516   :  { %s574_s8 = ssub.f32 %s572_s7, %s573_s5 }
 0x518   :  { %s575_s9 = smax.f32 %s925_s25, %s574_s8 }
 0x519   :  { %s576_s10 = sadd.f32 1e-05, %s575_s9 }
 0x51b   :  { %v577_v31 = vstv %s576_s10 }
 0x51c   :  { %850 = vrsqrt.f32 %v577_v31 }
 0x529   :  { %v851_v32 = vpop.eup %850 }
 0x52a   :  { %837 = vpush %v851_v32 }
 0x55b   :  { %s838_s11 = spop %837 }
 0x55c   :  { %s580_s12 = smul.f32 %s838_s11, %s571_s4  ;;  %v582_v33 = vstv %s838_s11 }
 0x55d   :  { %v583_v0 = vmul.f32 %v582_v33, %v992_v55 }
 0x55e   :  { %s581_s13 = ssub.f32 0.0, %s580_s12 }
 0x560   :  { %v584_v34 = vstv %s581_s13 }
 0x561   :  { %v585_v35 = vadd.f32 %v584_v34, %v583_v0 }
 0x563   :  { %v587_v36 = vmul.f32 0.01, %v585_v35  ;;  %vm586_vm4 = vcmp.ge.f32.partialorder %v585_v35, 0.0 }
 0x565   :  { %v588_v37 = vsel %vm586_vm4, %v585_v35, %v587_v36 }
 0x566   :  { %825 = vmatmul.mubr.f32.vlgmr.msra.gmra.mxu0 %v588_v37 }
 0x626   :  { %v659_v39 = vpop.f32.mrf.mxu0 }
 0x627   :  { %v660_v40 = vadd.f32 %v687_v38, %v659_v39 }
 0x628   :  { %v826_v41 = vpop.f32.mrf.mxu0 }
 0x629   :  { %663 = vst [vmem:[#allocation7] sm:$0xff] %v660_v40 }
 0x62a   :  { %903 = shalt.err (!%p900_p0)
}
 0x62b   :  { %673 = dma.vmem_to_hbm [thread:$0]  %s671_s15, 128, %s1031_s2, [#allocation4]  }
 0x62c   :  { %916 = dma.done.wait [#allocation4], 128  }
 0x62d   :  { %917 = vsyncadd [#allocation4], 4294967168 }
 0x62e   :  { %677 = vsyncpa [#allocation3], 1 }
 0x62f   :  { %678 = vsyncpa [#allocation6], 1 }
 0x630   :  { %679 = vsyncpa [#allocation4], 1 }

</bundles_post_ra>
